<compile_context>
chip_gen: v6e
topology: v6e:2x2x1
jax: 0.10.0
libtpu: 0.0.40
codegen_flags: <defaults>
</compile_context>

<pallas_src>
import jax
import jax.numpy as jnp
from jax import lax
from jax.experimental import pallas as pl
from jax.experimental.pallas import tpu as pltpu


def _biclassify_kernel(x_ref, w_ref, b_ref, o_ref):
    # x_ref: (TB, D); w_ref: (2, D) lane-dense; b_ref: (1, 2); o_ref: (TB, 2)
    x = x_ref[...]
    w = w_ref[...]
    # logits = x @ W.T + b  — contract D on both operands so the weight is
    # consumed in its lane-dense (2, D) layout.
    logits = lax.dot_general(
        x, w, (((1,), (1,)), ((), ())), preferred_element_type=jnp.float32
    ) + b_ref[...]
    # Numerically stable softmax over the 2 classes (dim=1).
    m = jnp.max(logits, axis=-1, keepdims=True)
    e = jnp.exp(logits - m)
    denom = jnp.sum(e, axis=-1, keepdims=True)
    o_ref[...] = (e / denom).astype(o_ref.dtype)


def biclassify_header_two(x, weight, bias, *, block_b=512):
    """Forward of BiClassifyHeaderTwo.

    x:      (B, seq_len*768) float32
    weight: (2, seq_len*768) float32  (PyTorch nn.Linear layout, NOT transposed)
    bias:   (2,)             float32
    returns softmax(x @ weight.T + bias, axis=1): (B, 2) float32
    """
    B, D = x.shape
    assert weight.shape == (2, D)
    b2 = bias.reshape(1, 2)

    # Batch tile: for tiny batches the block covers the whole array (always
    # legal); otherwise use a multiple-of-8 tile so Pallas can double-buffer.
    tb = B if B <= block_b else block_b
    grid = (pl.cdiv(B, tb),)

    # VMEM budget: 2x double-buffered x tiles + resident weight/bias/out +
    # headroom, capped comfortably under v7x's 64 MiB physical VMEM.
    x_buf_bytes = 2 * tb * D * 4
    vmem_limit = int(min(x_buf_bytes + (8 << 20), 40 << 20))

    cost = pl.CostEstimate(
        flops=2 * B * D * 2,
        transcendentals=2 * B,
        bytes_accessed=B * D * 4 + 2 * D * 4 + 2 * 4 + B * 2 * 4,
    )

    return pl.pallas_call(
        _biclassify_kernel,
        out_shape=jax.ShapeDtypeStruct((B, 2), jnp.float32),
        grid=grid,
        in_specs=[
            pl.BlockSpec((tb, D), lambda i: (i, 0)),   # x: tiled over batch
            pl.BlockSpec((2, D), lambda i: (0, 0)),    # weight: resident, lane-dense
            pl.BlockSpec((1, 2), lambda i: (0, 0)),    # bias: resident
        ],
        out_specs=pl.BlockSpec((tb, 2), lambda i: (i, 0)),
        compiler_params=pltpu.CompilerParams(
            dimension_semantics=("parallel",),
            vmem_limit_bytes=vmem_limit,
        ),
        cost_estimate=cost,
    )(x, weight, b2)


if __name__ == "__main__":
    seq_len = 8
    in_features = seq_len * 768         # 6144
    batch = 2

    key = jax.random.PRNGKey(0)
    kx, kw, kb = jax.random.split(key, 3)

    # Deterministic "parameter" init (synthetic, matching nn.Linear shapes).
    bound = 1.0 / (in_features ** 0.5)
    weight = jax.random.uniform(kw, (2, in_features), jnp.float32, -bound, bound)
    bias = jax.random.uniform(kb, (2,), jnp.float32, -bound, bound)

    x = jax.random.normal(kx, (batch, in_features), jnp.float32)

    out = biclassify_header_two(x, weight, bias)
    out = jax.block_until_ready(out)

    # Reference check in plain JAX.
    ref = jax.nn.softmax(x @ weight.T + bias, axis=1)
    assert out.shape == (batch, 2)
    assert jnp.allclose(out, ref, atol=1e-5, rtol=1e-5)

    print("KERNEL_OK")
</pallas_src>

<mosaic_0001>
module attributes {stable_mosaic.version = 11 : i64} {
  func.func @_biclassify_kernel(%arg0: i32, %arg1: memref<2x6144xf32, #tpu.memory_space<vmem>>, %arg2: memref<2x6144xf32, #tpu.memory_space<vmem>>, %arg3: memref<1x2xf32, #tpu.memory_space<vmem>>, %arg4: memref<2x2xf32, #tpu.memory_space<vmem>>) attributes {dimension_semantics = [#tpu.dimension_semantics<parallel>], iteration_bounds = array<i64: 1>, scalar_prefetch = 0 : i64, scratch_operands = 0 : i64, tpu.core_type = #tpu.core_type<tc>, window_params = [{transform_indices = @transform_0, window_bounds = array<i64: 2, 6144>}, {pipeline_mode = #tpu.pipeline_mode<synchronous>, transform_indices = @transform_1, window_bounds = array<i64: 2, 6144>}, {pipeline_mode = #tpu.pipeline_mode<synchronous>, transform_indices = @transform_2, window_bounds = array<i64: 1, 2>}, {transform_indices = @transform_3, window_bounds = array<i64: 2, 2>}]} {
    %c0 = arith.constant 0 : index
    %c0_0 = arith.constant 0 : index
    %0 = vector.load %arg1[%c0, %c0_0] : memref<2x6144xf32, #tpu.memory_space<vmem>>, vector<2x6144xf32>
    %c0_1 = arith.constant 0 : index
    %c0_2 = arith.constant 0 : index
    %1 = vector.load %arg2[%c0_1, %c0_2] : memref<2x6144xf32, #tpu.memory_space<vmem>>, vector<2x6144xf32>
    %cst = arith.constant dense<0.000000e+00> : vector<2x2xf32>
    %2 = tpu.matmul %0, %1, %cst {dimension_numbers = #tpu.dot_dimension_numbers<[1], [1], [0], [0], [0, 0, 1, 0], [], []>} : vector<2x6144xf32>, vector<2x6144xf32>, vector<2x2xf32> -> vector<2x2xf32>
    %c0_3 = arith.constant 0 : index
    %c0_4 = arith.constant 0 : index
    %3 = vector.load %arg3[%c0_3, %c0_4] : memref<1x2xf32, #tpu.memory_space<vmem>>, vector<1x2xf32>
    %4 = vector.broadcast %3 : vector<1x2xf32> to vector<2x2xf32>
    %5 = arith.addf %2, %4 : vector<2x2xf32>
    %cst_5 = arith.constant dense<0xFF800000> : vector<2xf32>
    %6 = vector.multi_reduction <maximumf>, %5, %cst_5 [1] : vector<2x2xf32> to vector<2xf32>
    %7 = vector.shape_cast %6 : vector<2xf32> to vector<2x1xf32>
    %8 = vector.broadcast %7 : vector<2x1xf32> to vector<2x2xf32>
    %9 = arith.subf %5, %8 : vector<2x2xf32>
    %10 = math.exp %9 : vector<2x2xf32>
    %cst_6 = arith.constant dense<0.000000e+00> : vector<2xf32>
    %11 = vector.multi_reduction <add>, %10, %cst_6 [1] : vector<2x2xf32> to vector<2xf32>
    %12 = vector.shape_cast %11 : vector<2xf32> to vector<2x1xf32>
    %13 = vector.broadcast %12 : vector<2x1xf32> to vector<2x2xf32>
    %14 = arith.divf %10, %13 : vector<2x2xf32>
    %c0_7 = arith.constant 0 : index
    %c0_8 = arith.constant 0 : index
    %15 = vector.load %arg4[%c0_7, %c0_8] : memref<2x2xf32, #tpu.memory_space<vmem>>, vector<2x2xf32>
    tpu.vector_store %arg4[%c0_7, %c0_8], %14 {strides = array<i32>} : memref<2x2xf32, #tpu.memory_space<vmem>>, vector<2x2xf32>,
    return
  }
  func.func @transform_0(%arg0: i32) -> (i32, i32) {
    %c0_i32 = arith.constant 0 : i32
    %c0_i32_0 = arith.constant 0 : i32
    return %arg0, %c0_i32 : i32, i32
  }
  func.func @transform_1(%arg0: i32) -> (i32, i32) {
    %c0_i32 = arith.constant 0 : i32
    %c0_i32_0 = arith.constant 0 : i32
    %c0_i32_1 = arith.constant 0 : i32
    return %c0_i32, %c0_i32_0 : i32, i32
  }
  func.func @transform_2(%arg0: i32) -> (i32, i32) {
    %c0_i32 = arith.constant 0 : i32
    %c0_i32_0 = arith.constant 0 : i32
    %c0_i32_1 = arith.constant 0 : i32
    return %c0_i32, %c0_i32_0 : i32, i32
  }
  func.func @transform_3(%arg0: i32) -> (i32, i32) {
    %c0_i32 = arith.constant 0 : i32
    %c0_i32_0 = arith.constant 0 : i32
    return %arg0, %c0_i32 : i32, i32
  }
}

</mosaic_0001>

<bundles_post_ra>
// kernel: tpu_custom_call.1
= control target key start
LH: loop header
LB: loop body
LE: loop exit
PB: predicated region body
PF: predicated region fallthrough
CT: control target
= control target key end

     0   :  { %8 = vsyncpa [#allocation3], 0  ;;  %s2495_s0 = inlined_call_operand.hbm [shape: f32[2,6144], index: 0, kind: input, shape index: {}]   ;;  %s2496_s1 = inlined_call_operand.hbm [shape: f32[2,6144], index: 1, kind: input, shape index: {}]   ;;  %s2497_s2 = inlined_call_operand.vmem [shape: f32[1,2], index: 2, kind: input, shape index: {}]   ;;  %s2498_s3 = inlined_call_operand.hbm [shape: f32[2,2], index: 3, kind: output, shape index: {}]  }
   0x1   :  { %9 = vsyncpa [#allocation6], 0 }
   0x2   :  { %10 = vsyncpa [#allocation4], 0  ;;  %s2406_s12 = smov [#allocation2]   ;;  %s2407_s14 = smov [#allocation5]  }
   0x3   :  { %s17_s13 = sshll.u32 %s2406_s12, 4  ;;  %s27_s15 = sshll.u32 %s2407_s14, 4  ;;  %s18_s13 = int_to_ptr.vmem [resolvable:$true] %s17_s13  ;;  %s28_s15 = int_to_ptr.vmem [resolvable:$true] %s27_s15 }
   0x4   :  { %s2348_s16 = scalar_lea.vmem %s18_s13, 1536  ;;  %p2353_p1 = scmp.lt.s32.totalorder %s18_s13, %s18_s13 }
   0x5   :  { %p2349_p0 = scmp.ne.s32.totalorder %s18_s13, %s2348_s16  ;;  %p2354_p2 = scmp.lt.s32.totalorder %s2348_s16, %s2348_s16 }
   0x7   :  { %p2355_p3 = por %p2354_p2, %p2353_p1 }
   0x9   :  { %p2356_p4 = pnand %p2355_p3, %p2349_p0 }
   0xb   :  { %2359 = shalt.err (!%p2356_p4)
}
   0xc   :  { %20 = dma.hbm_to_vmem [thread:$0]  %s2495_s0, 1536, %s18_s13, [#allocation3]  }
   0xd   :  { %s2368_s19 = scalar_lea.vmem %s28_s15, 1536  ;;  %p2373_p6 = scmp.lt.s32.totalorder %s28_s15, %s28_s15 }
   0xe   :  { %p2369_p5 = scmp.ne.s32.totalorder %s28_s15, %s2368_s19  ;;  %p2374_p7 = scmp.lt.s32.totalorder %s2368_s19, %s2368_s19 }
  0x10   :  { %p2375_p8 = por %p2374_p7, %p2373_p6 }
  0x12   :  { %p2376_p9 = pnand %p2375_p8, %p2369_p5 }
  0x14   :  { %2379 = shalt.err (!%p2376_p9)
}
  0x15   :  { %30 = dma.hbm_to_vmem [thread:$0]  %s2496_s1, 1536, %s28_s15, [#allocation6]  }
  0x16   :  { %2400 = dma.done.wait [#allocation3], 1536  }
  0x17   :  { %2401 = vsyncadd [#allocation3], 4294965760 }
  0x18   :  { %2402 = dma.done.wait [#allocation6], 1536  }
  0x19   :  { %2403 = vsyncadd [#allocation6], 4294965760  ;;  %v86_v0 = vlaneseq  ;;  %v2408_v1 = vmov 1983009808   ;;  %v51_v6 = vld [vmem:[#allocation5] sm:$0xff]  ;;  %v52_v8 = vld [vmem:[#allocation5 + $0x8] sm:$0xff] }
  0x1a   :  { %v84_v2 = vunpack.c.l.s4 %v2408_v1  ;;  %v39_v7 = vld [vmem:[#allocation2] sm:$0xff]  ;;  %v346_v10 = vcombine.high %v51_v6, %v51_v6  ;;  %v40_v13 = vld [vmem:[#allocation2 + $0x8] sm:$0xff]  ;;  %v53_v14 = vld [vmem:[#allocation5 + $0x10] sm:$0xff]  ;;  %v363_v16 = vcombine.high %v52_v8, %v52_v8  ;;  %vm2278_vm0 = vcmask 9216  }
  0x1b   :  { %v87_v3 = vshrl.u32 %v86_v0, 7  ;;  %v82_v15 = vcombine.high %v39_v7, %v39_v7  ;;  %v41_v23 = vld [vmem:[#allocation2 + $0x10] sm:$0xff]  ;;  %v54_v24 = vld [vmem:[#allocation5 + $0x18] sm:$0xff]  ;;  %v99_v30 = vcombine.high %v40_v13, %v40_v13  ;;  %v380_v31 = vcombine.high %v53_v14, %v53_v14  ;;  %v55_v42 = vld [vmem:[#allocation5 + $0x20] sm:$0xff] }
  0x1c   :  { %v85_v4 = vunpack.c.0.s8 %v84_v2  ;;  %v116_v38 = vcombine.high %v41_v23, %v41_v23  ;;  %v42_v39 = vld [vmem:[#allocation2 + $0x18] sm:$0xff]  ;;  %v397_v41 = vcombine.high %v54_v24, %v54_v24  ;;  %v414_v51 = vcombine.high %v55_v42, %v55_v42  ;;  %v43_v52 = vld [vmem:[#allocation2 + $0x20] sm:$0xff]  ;;  %v56_v53 = vld [vmem:[#allocation5 + $0x28] sm:$0xff] }
  0x1d   :  { %v133_v50 = vcombine.high %v42_v39, %v42_v39  ;;  %v150_v60 = vcombine.high %v43_v52, %v43_v52  ;;  %v431_v61 = vcombine.high %v56_v53, %v56_v53  ;;  %v44_v62 = vld [vmem:[#allocation2 + $0x28] sm:$0xff]  ;;  %v57_v1 = vld [vmem:[#allocation5 + $0x30] sm:$0xff] }
  0x1e   :  { %v2436_v5 = vsub.s32 %v85_v4, %v87_v3 }
  0x20   :  { %v353_v9 = vrot.slane %v51_v6, %v2436_v5  ;;  %v89_v11 = vrot.slane %v39_v7, %v2436_v5  ;;  %v370_v12 = vrot.slane %v52_v8, %v2436_v5  ;;  %v106_v17 = vrot.slane %v40_v13, %v2436_v5 }
  0x21   :  { %v387_v18 = vrot.slane %v53_v14, %v2436_v5  ;;  %v360_v20 = vrot.slane %v346_v10, %v2436_v5  ;;  %v96_v25 = vrot.slane %v82_v15, %v2436_v5  ;;  %v377_v26 = vrot.slane %v363_v16, %v2436_v5 }
  0x22   :  { %v361_v19 = vcombine.high %v353_v9, %v353_v9  ;;  %v97_v21 = vcombine.high %v89_v11, %v89_v11  ;;  %v378_v22 = vcombine.high %v370_v12, %v370_v12  ;;  %v114_v27 = vcombine.high %v106_v17, %v106_v17 }
  0x23   :  { %v395_v28 = vcombine.high %v387_v18, %v387_v18  ;;  %v362_v29 = vcombine.high %v360_v20, %v360_v20  ;;  %v98_v32 = vcombine.high %v96_v25, %v96_v25  ;;  %v379_v33 = vcombine.high %v377_v26, %v377_v26 }
  0x24   :  { %628 = vmatprep.subr.mxu0 %v361_v19  ;;  %662 = vmatprep.mubr.f32.mxu0 %v97_v21  ;;  %v123_v34 = vrot.slane %v41_v23, %v2436_v5  ;;  %v404_v35 = vrot.slane %v54_v24, %v2436_v5  ;;  %v113_v36 = vrot.slane %v99_v30, %v2436_v5  ;;  %v46_v21 = vld [vmem:[#allocation2 + $0x38] sm:$0xff]  ;;  %v59_v24 = vld [vmem:[#allocation5 + $0x40] sm:$0xff] }
  0x25   :  { %629 = vmatpush1.xpose.msra.mxu0 %v353_v9  ;;  %698 = vmatprep.subr.mxu1 %v362_v29  ;;  %v394_v37 = vrot.slane %v380_v31, %v2436_v5  ;;  %v130_v45 = vrot.slane %v116_v38, %v2436_v5  ;;  %v411_v47 = vrot.slane %v397_v41, %v2436_v5 }
  0x26   :  { %768 = vmatprep.subr.mxu0 %v378_v22  ;;  %699 = vmatpush1.xpose.msra.mxu1 %v360_v20  ;;  %v131_v40 = vcombine.high %v123_v34, %v123_v34  ;;  %v115_v43 = vcombine.high %v113_v36, %v113_v36  ;;  %v412_v46 = vcombine.high %v404_v35, %v404_v35 }
  0x27   :  { %732 = vmatprep.mubr.f32.mxu1 %v98_v32  ;;  %838 = vmatprep.subr.mxu1 %v379_v33  ;;  %v396_v44 = vcombine.high %v394_v37, %v394_v37  ;;  %v140_v48 = vrot.slane %v42_v39, %v2436_v5  ;;  %v421_v49 = vrot.slane %v55_v42, %v2436_v5  ;;  %v47_v33 = vld [vmem:[#allocation2 + $0x40] sm:$0xff] }
  0x28   :  { %663 = vmatmul.mubr.f32.vlgmr.msra.gmra.mxu0 %v89_v11  ;;  %v132_v54 = vcombine.high %v130_v45, %v130_v45  ;;  %v413_v55 = vcombine.high %v411_v47, %v411_v47  ;;  %v147_v57 = vrot.slane %v133_v50, %v2436_v5  ;;  %v428_v58 = vrot.slane %v414_v51, %v2436_v5  ;;  %v45_v11 = vld [vmem:[#allocation2 + $0x30] sm:$0xff] }
  0x29   :  { %769 = vmatpush1.xpose.msra.mxu0 %v370_v12  ;;  %802 = vmatprep.mubr.f32.mxu0 %v114_v27  ;;  %v148_v56 = vcombine.high %v140_v48, %v140_v48  ;;  %v157_v59 = vrot.slane %v43_v52, %v2436_v5  ;;  %v429_v63 = vcombine.high %v421_v49, %v421_v49  ;;  %v58_v12 = vld [vmem:[#allocation5 + $0x38] sm:$0xff] }
  0x2a   :  { %733 = vmatmul.mubr.f32.vlgmr.msra.gmra.mxu1 %v96_v25  ;;  %908 = vmatprep.subr.mxu0 %v395_v28  ;;  %v438_v0 = vrot.slane %v56_v53, %v2436_v5  ;;  %v149_v2 = vcombine.high %v147_v57, %v147_v57  ;;  %v164_v3 = vrot.slane %v150_v60, %v2436_v5  ;;  %v62_v60 = vld [vmem:[#allocation5 + $0x58] sm:$0xff] }
  0x2b   :  { %839 = vmatpush1.xpose.msra.mxu1 %v377_v26  ;;  %872 = vmatprep.mubr.f32.mxu1 %v115_v43  ;;  %v445_v4 = vrot.slane %v431_v61, %v2436_v5  ;;  %v430_v6 = vcombine.high %v428_v58, %v428_v58  ;;  %v167_v7 = vcombine.high %v44_v62, %v44_v62 }
  0x2c   :  { %803 = vmatmul.mubr.f32.vlgmr.msra.gmra.mxu0 %v106_v17  ;;  %978 = vmatprep.subr.mxu1 %v396_v44  ;;  %v165_v8 = vcombine.high %v157_v59, %v157_v59  ;;  %v174_v9 = vrot.slane %v44_v62, %v2436_v5  ;;  %v448_v10 = vcombine.high %v57_v1, %v57_v1 }
  0x2d   :  { %909 = vmatpush1.xpose.msra.mxu0 %v387_v18  ;;  %942 = vmatprep.mubr.f32.mxu0 %v131_v40  ;;  %v446_v13 = vcombine.high %v438_v0, %v438_v0  ;;  %v455_v14 = vrot.slane %v57_v1, %v2436_v5  ;;  %v166_v15 = vcombine.high %v164_v3, %v164_v3 }
  0x2e   :  { %873 = vmatmul.mubr.f32.vlgmr.msra.gmra.mxu1 %v113_v36  ;;  %1048 = vmatprep.subr.mxu0 %v412_v46  ;;  %v447_v16 = vcombine.high %v445_v4, %v445_v4  ;;  %v181_v17 = vrot.slane %v167_v7, %v2436_v5  ;;  %v462_v18 = vrot.slane %v448_v10, %v2436_v5  ;;  %v60_v36 = vld [vmem:[#allocation5 + $0x48] sm:$0xff] }
  0x2f   :  { %979 = vmatpush1.xpose.msra.mxu1 %v394_v37  ;;  %1012 = vmatprep.mubr.f32.mxu1 %v132_v54  ;;  %v184_v19 = vcombine.high %v45_v11, %v45_v11  ;;  %v465_v20 = vcombine.high %v58_v12, %v58_v12  ;;  %v182_v22 = vcombine.high %v174_v9, %v174_v9 }
  0x30   :  { %943 = vmatmul.mubr.f32.vlgmr.msra.gmra.mxu0 %v123_v34  ;;  %1118 = vmatprep.subr.mxu1 %v413_v55  ;;  %v191_v23 = vrot.slane %v45_v11, %v2436_v5  ;;  %v463_v25 = vcombine.high %v455_v14, %v455_v14  ;;  %v472_v26 = vrot.slane %v58_v12, %v2436_v5 }
  0x31   :  { %1049 = vmatpush1.xpose.msra.mxu0 %v404_v35  ;;  %1082 = vmatprep.mubr.f32.mxu0 %v148_v56  ;;  %v183_v27 = vcombine.high %v181_v17, %v181_v17  ;;  %v198_v28 = vrot.slane %v184_v19, %v2436_v5  ;;  %v201_v29 = vcombine.high %v46_v21, %v46_v21 }
  0x32   :  { %1013 = vmatmul.mubr.f32.vlgmr.msra.gmra.mxu1 %v130_v45  ;;  %1188 = vmatprep.subr.mxu0 %v429_v63  ;;  %v464_v30 = vcombine.high %v462_v18, %v462_v18  ;;  %v479_v31 = vrot.slane %v465_v20, %v2436_v5  ;;  %v482_v32 = vcombine.high %v59_v24, %v59_v24  ;;  %v48_v45 = vld [vmem:[#allocation2 + $0x48] sm:$0xff] }
  0x33   :  { %1119 = vmatpush1.xpose.msra.mxu1 %v411_v47  ;;  %1152 = vmatprep.mubr.f32.mxu1 %v149_v2  ;;  %v199_v34 = vcombine.high %v191_v23, %v191_v23  ;;  %v208_v35 = vrot.slane %v46_v21, %v2436_v5  ;;  %v480_v37 = vcombine.high %v472_v26, %v472_v26 }
  0x34   :  { %1083 = vmatmul.mubr.f32.vlgmr.msra.gmra.mxu0 %v140_v48  ;;  %1258 = vmatprep.subr.mxu1 %v430_v6  ;;  %v489_v38 = vrot.slane %v59_v24, %v2436_v5  ;;  %v200_v39 = vcombine.high %v198_v28, %v198_v28  ;;  %v215_v40 = vrot.slane %v201_v29, %v2436_v5  ;;  %v61_v48 = vld [vmem:[#allocation5 + $0x50] sm:$0xff]  ;;  %v50_v6 = vld [vmem:[#allocation2 + $0x58] sm:$0xff] }
  0x35   :  { %1189 = vmatpush1.xpose.msra.mxu0 %v421_v49  ;;  %1222 = vmatprep.mubr.f32.mxu0 %v165_v8  ;;  %v218_v41 = vcombine.high %v47_v33, %v47_v33  ;;  %v481_v42 = vcombine.high %v479_v31, %v479_v31  ;;  %v496_v43 = vrot.slane %v482_v32, %v2436_v5 }
  0x36   :  { %1153 = vmatmul.mubr.f32.vlgmr.msra.gmra.mxu1 %v147_v57  ;;  %1328 = vmatprep.subr.mxu0 %v446_v13  ;;  %v499_v44 = vcombine.high %v60_v36, %v60_v36  ;;  %v216_v46 = vcombine.high %v208_v35, %v208_v35  ;;  %v225_v47 = vrot.slane %v47_v33, %v2436_v5  ;;  %v49_v57 = vld [vmem:[#allocation2 + $0x50] sm:$0xff] }
  0x37   :  { %1259 = vmatpush1.xpose.msra.mxu1 %v428_v58  ;;  %1292 = vmatprep.mubr.f32.mxu1 %v166_v15  ;;  %v497_v49 = vcombine.high %v489_v38, %v489_v38  ;;  %v506_v50 = vrot.slane %v60_v36, %v2436_v5  ;;  %v217_v51 = vcombine.high %v215_v40, %v215_v40 }
  0x38   :  { %1223 = vmatmul.mubr.f32.vlgmr.msra.gmra.mxu0 %v157_v59  ;;  %1398 = vmatprep.subr.mxu1 %v447_v16  ;;  %v232_v52 = vrot.slane %v218_v41, %v2436_v5  ;;  %v235_v53 = vcombine.high %v48_v45, %v48_v45  ;;  %v498_v54 = vcombine.high %v496_v43, %v496_v43 }
  0x39   :  { %1329 = vmatpush1.xpose.msra.mxu0 %v438_v0  ;;  %1362 = vmatprep.mubr.f32.mxu0 %v182_v22  ;;  %v513_v55 = vrot.slane %v499_v44, %v2436_v5  ;;  %v516_v56 = vcombine.high %v61_v48, %v61_v48  ;;  %v233_v58 = vcombine.high %v225_v47, %v225_v47 }
  0x3a   :  { %1293 = vmatmul.mubr.f32.vlgmr.msra.gmra.mxu1 %v164_v3  ;;  %1468 = vmatprep.subr.mxu0 %v463_v25  ;;  %v242_v59 = vrot.slane %v48_v45, %v2436_v5  ;;  %v514_v61 = vcombine.high %v506_v50, %v506_v50  ;;  %v523_v62 = vrot.slane %v61_v48, %v2436_v5 }
  0x3b   :  { %1399 = vmatpush1.xpose.msra.mxu1 %v445_v4  ;;  %1432 = vmatprep.mubr.f32.mxu1 %v183_v27  ;;  %v234_v63 = vcombine.high %v232_v52, %v232_v52  ;;  %v249_v0 = vrot.slane %v235_v53, %v2436_v5  ;;  %v252_v1 = vcombine.high %v49_v57, %v49_v57 }
  0x3c   :  { %1363 = vmatmul.mubr.f32.vlgmr.msra.gmra.mxu0 %v174_v9  ;;  %1538 = vmatprep.subr.mxu1 %v464_v30  ;;  %v515_v2 = vcombine.high %v513_v55, %v513_v55  ;;  %v530_v3 = vrot.slane %v516_v56, %v2436_v5  ;;  %v533_v4 = vcombine.high %v62_v60, %v62_v60 }
  0x3d   :  { %1469 = vmatpush1.xpose.msra.mxu0 %v455_v14  ;;  %1502 = vmatprep.mubr.f32.mxu0 %v199_v34  ;;  %v250_v7 = vcombine.high %v242_v59, %v242_v59  ;;  %v259_v8 = vrot.slane %v49_v57, %v2436_v5  ;;  %v531_v9 = vcombine.high %v523_v62, %v523_v62 }
  0x3e   :  { %1433 = vmatmul.mubr.f32.vlgmr.msra.gmra.mxu1 %v181_v17  ;;  %1608 = vmatprep.subr.mxu0 %v480_v37  ;;  %v540_v10 = vrot.slane %v62_v60, %v2436_v5  ;;  %v251_v11 = vcombine.high %v249_v0, %v249_v0  ;;  %v266_v12 = vrot.slane %v252_v1, %v2436_v5 }
  0x3f   :  { %1539 = vmatpush1.xpose.msra.mxu1 %v462_v18  ;;  %1572 = vmatprep.mubr.f32.mxu1 %v200_v39  ;;  %v269_v13 = vcombine.high %v50_v6, %v50_v6  ;;  %v532_v14 = vcombine.high %v530_v3, %v530_v3  ;;  %v547_v15 = vrot.slane %v533_v4, %v2436_v5 }
  0x40   :  { %1503 = vmatmul.mubr.f32.vlgmr.msra.gmra.mxu0 %v191_v23  ;;  %1678 = vmatprep.subr.mxu1 %v481_v42  ;;  %v267_v16 = vcombine.high %v259_v8, %v259_v8  ;;  %v276_v17 = vrot.slane %v50_v6, %v2436_v5  ;;  %v548_v18 = vcombine.high %v540_v10, %v540_v10 }
  0x41   :  { %1609 = vmatpush1.xpose.msra.mxu0 %v472_v26  ;;  %1642 = vmatprep.mubr.f32.mxu0 %v216_v46  ;;  %v268_v19 = vcombine.high %v266_v12, %v266_v12  ;;  %v283_v20 = vrot.slane %v269_v13, %v2436_v5  ;;  %v549_v21 = vcombine.high %v547_v15, %v547_v15  ;;  %v2307_v5 = vld [vmem:[%s2497_s2] ss:$0 sm:$0xff]  ;;  %s2409_s2 = smov [#allocation7]  }
  0x42   :  { %1573 = vmatmul.mubr.f32.vlgmr.msra.gmra.mxu1 %v198_v28  ;;  %1748 = vmatprep.subr.mxu0 %v497_v49  ;;  %v284_v22 = vcombine.high %v276_v17, %v276_v17  ;;  %s2297_s22 = sshll.u32 %s2409_s2, 4  ;;  %s2298_s22 = int_to_ptr.vmem [resolvable:$true] %s2297_s22 }
  0x43   :  { %1679 = vmatpush1.xpose.msra.mxu1 %v479_v31  ;;  %1712 = vmatprep.mubr.f32.mxu1 %v217_v51  ;;  %v285_v23 = vcombine.high %v283_v20, %v283_v20  ;;  %s2380_s23 = scalar_lea.vmem %s2298_s22, 32  ;;  %p2385_p11 = scmp.lt.s32.totalorder %s2298_s22, %s2298_s22 }
  0x44   :  { %1643 = vmatmul.mubr.f32.vlgmr.msra.gmra.mxu0 %v208_v35  ;;  %1818 = vmatprep.subr.mxu1 %v498_v54  ;;  %p2381_p10 = scmp.ne.s32.totalorder %s2298_s22, %s2380_s23  ;;  %p2386_p12 = scmp.lt.s32.totalorder %s2380_s23, %s2380_s23 }
  0x45   :  { %1749 = vmatpush1.xpose.msra.mxu0 %v489_v38  ;;  %1782 = vmatprep.mubr.f32.mxu0 %v233_v58 }
  0x46   :  { %1713 = vmatmul.mubr.f32.vlgmr.msra.gmra.mxu1 %v215_v40  ;;  %1888 = vmatprep.subr.mxu0 %v514_v61  ;;  %p2387_p13 = por %p2386_p12, %p2385_p11 }
  0x47   :  { %1819 = vmatpush1.xpose.msra.mxu1 %v496_v43  ;;  %1852 = vmatprep.mubr.f32.mxu1 %v234_v63 }
  0x48   :  { %1783 = vmatmul.mubr.f32.vlgmr.msra.gmra.mxu0 %v225_v47  ;;  %1958 = vmatprep.subr.mxu1 %v515_v2  ;;  %p2388_p0 = pnand %p2387_p13, %p2381_p10 }
  0x49   :  { %1889 = vmatpush1.xpose.msra.mxu0 %v506_v50  ;;  %1922 = vmatprep.mubr.f32.mxu0 %v250_v7 }
  0x4a   :  { %1853 = vmatmul.mubr.f32.vlgmr.msra.gmra.mxu1 %v232_v52  ;;  %2028 = vmatprep.subr.mxu0 %v531_v9 }
  0x4b   :  { %1959 = vmatpush1.xpose.msra.mxu1 %v513_v55  ;;  %1992 = vmatprep.mubr.f32.mxu1 %v251_v11 }
  0x4c   :  { %1923 = vmatmul.mubr.f32.vlgmr.msra.gmra.mxu0 %v242_v59  ;;  %2098 = vmatprep.subr.mxu1 %v532_v14 }
  0x4d   :  { %2029 = vmatpush1.xpose.msra.mxu0 %v523_v62  ;;  %2062 = vmatprep.mubr.f32.mxu0 %v267_v16 }
  0x4e   :  { %1993 = vmatmul.mubr.f32.vlgmr.msra.gmra.mxu1 %v249_v0  ;;  %2168 = vmatprep.subr.mxu0 %v548_v18 }
  0x4f   :  { %2099 = vmatpush1.xpose.msra.mxu1 %v530_v3  ;;  %2132 = vmatprep.mubr.f32.mxu1 %v268_v19 }
  0x50   :  { %2063 = vmatmul.mubr.f32.vlgmr.msra.gmra.mxu0 %v259_v8  ;;  %2238 = vmatprep.subr.mxu1 %v549_v21 }
  0x51   :  { %2169 = vmatpush1.xpose.msra.mxu0 %v540_v10  ;;  %2202 = vmatprep.mubr.f32.mxu0 %v284_v22 }
  0x52   :  { %2133 = vmatmul.mubr.f32.vlgmr.msra.gmra.mxu1 %v266_v12 }
  0x53   :  { %2239 = vmatpush1.xpose.msra.mxu1 %v547_v15  ;;  %2272 = vmatprep.mubr.f32.mxu1 %v285_v23 }
  0x54   :  { %2203 = vmatmul.mubr.f32.vlgmr.msra.gmra.mxu0 %v276_v17 }
  0x56   :  { %2273 = vmatmul.mubr.f32.vlgmr.msra.gmra.mxu1 %v283_v20 }
  0xe8   :  { %v664_v24 = vpop.f32.mrf.mxu0 }
  0xe9   :  { %v665_v25 = vadd.f32 %v2307_v5, %v664_v24 }
  0xea   :  { %v666_v26 = vpop.f32.mrf.mxu0  ;;  %v734_v27 = vpop.f32.mrf.mxu1 }
  0xeb   :  { %v735_v28 = vadd.f32 %v734_v27, %v665_v25 }
  0xec   :  { %v736_v29 = vpop.f32.mrf.mxu1  ;;  %v804_v30 = vpop.f32.mrf.mxu0 }
  0xed   :  { %v805_v31 = vadd.f32 %v804_v30, %v735_v28 }
  0xee   :  { %v806_v32 = vpop.f32.mrf.mxu0  ;;  %v874_v33 = vpop.f32.mrf.mxu1 }
  0xef   :  { %v875_v34 = vadd.f32 %v874_v33, %v805_v31 }
  0xf0   :  { %v876_v35 = vpop.f32.mrf.mxu1  ;;  %v944_v36 = vpop.f32.mrf.mxu0 }
  0xf1   :  { %v945_v37 = vadd.f32 %v944_v36, %v875_v34 }
  0xf2   :  { %v946_v38 = vpop.f32.mrf.mxu0  ;;  %v1014_v39 = vpop.f32.mrf.mxu1 }
  0xf3   :  { %v1015_v40 = vadd.f32 %v1014_v39, %v945_v37 }
  0xf4   :  { %v1016_v41 = vpop.f32.mrf.mxu1  ;;  %v1084_v42 = vpop.f32.mrf.mxu0 }
  0xf5   :  { %v1085_v43 = vadd.f32 %v1084_v42, %v1015_v40 }
  0xf6   :  { %v1086_v44 = vpop.f32.mrf.mxu0  ;;  %v1154_v45 = vpop.f32.mrf.mxu1 }
  0xf7   :  { %v1155_v46 = vadd.f32 %v1154_v45, %v1085_v43 }
  0xf8   :  { %v1156_v47 = vpop.f32.mrf.mxu1  ;;  %v1224_v48 = vpop.f32.mrf.mxu0 }
  0xf9   :  { %v1225_v49 = vadd.f32 %v1224_v48, %v1155_v46 }
  0xfa   :  { %v1226_v50 = vpop.f32.mrf.mxu0  ;;  %v1294_v51 = vpop.f32.mrf.mxu1 }
  0xfb   :  { %v1295_v52 = vadd.f32 %v1294_v51, %v1225_v49 }
  0xfc   :  { %v1296_v53 = vpop.f32.mrf.mxu1  ;;  %v1364_v54 = vpop.f32.mrf.mxu0 }
  0xfd   :  { %v1365_v55 = vadd.f32 %v1364_v54, %v1295_v52 }
  0xfe   :  { %v1366_v56 = vpop.f32.mrf.mxu0  ;;  %v1434_v57 = vpop.f32.mrf.mxu1 }
  0xff   :  { %v1435_v58 = vadd.f32 %v1434_v57, %v1365_v55 }
 0x100   :  { %v1436_v59 = vpop.f32.mrf.mxu1  ;;  %v1504_v60 = vpop.f32.mrf.mxu0 }
 0x101   :  { %v1505_v61 = vadd.f32 %v1504_v60, %v1435_v58 }
 0x102   :  { %v1506_v62 = vpop.f32.mrf.mxu0  ;;  %v1574_v63 = vpop.f32.mrf.mxu1 }
 0x103   :  { %v1575_v0 = vadd.f32 %v1574_v63, %v1505_v61 }
 0x104   :  { %v1576_v1 = vpop.f32.mrf.mxu1  ;;  %v1644_v2 = vpop.f32.mrf.mxu0 }
 0x105   :  { %v1645_v3 = vadd.f32 %v1644_v2, %v1575_v0 }
 0x106   :  { %v1646_v4 = vpop.f32.mrf.mxu0  ;;  %v1714_v6 = vpop.f32.mrf.mxu1 }
 0x107   :  { %v1715_v7 = vadd.f32 %v1714_v6, %v1645_v3 }
 0x108   :  { %v1716_v8 = vpop.f32.mrf.mxu1  ;;  %v1784_v9 = vpop.f32.mrf.mxu0 }
 0x109   :  { %v1785_v10 = vadd.f32 %v1784_v9, %v1715_v7 }
 0x10a   :  { %v1786_v11 = vpop.f32.mrf.mxu0  ;;  %v1854_v12 = vpop.f32.mrf.mxu1 }
 0x10b   :  { %v1855_v13 = vadd.f32 %v1854_v12, %v1785_v10 }
 0x10c   :  { %v1856_v14 = vpop.f32.mrf.mxu1  ;;  %v1924_v15 = vpop.f32.mrf.mxu0 }
 0x10d   :  { %v1925_v16 = vadd.f32 %v1924_v15, %v1855_v13 }
 0x10e   :  { %v1926_v17 = vpop.f32.mrf.mxu0  ;;  %v1994_v18 = vpop.f32.mrf.mxu1 }
 0x10f   :  { %v1995_v19 = vadd.f32 %v1994_v18, %v1925_v16 }
 0x110   :  { %v1996_v20 = vpop.f32.mrf.mxu1  ;;  %v2064_v21 = vpop.f32.mrf.mxu0 }
 0x111   :  { %v2065_v22 = vadd.f32 %v2064_v21, %v1995_v19 }
 0x112   :  { %v2066_v23 = vpop.f32.mrf.mxu0  ;;  %v2134_v5 = vpop.f32.mrf.mxu1 }
 0x113   :  { %v2135_v24 = vadd.f32 %v2134_v5, %v2065_v22 }
 0x114   :  { %v2136_v25 = vpop.f32.mrf.mxu1  ;;  %v2204_v26 = vpop.f32.mrf.mxu0 }
 0x115   :  { %v2205_v27 = vadd.f32 %v2204_v26, %v2135_v24 }
 0x116   :  { %v2206_v28 = vpop.f32.mrf.mxu0  ;;  %v2274_v29 = vpop.f32.mrf.mxu1 }
 0x117   :  { %v2275_v30 = vadd.f32 %v2274_v29, %v2205_v27 }
 0x118   :  { %v2276_v31 = vpop.f32.mrf.mxu1 }
 0x119   :  { %v2279_v32 = vsel %vm2278_vm0, %v2275_v30, -inf }
 0x11a   :  { %2280 = vmax.xlane.f32.xlu0 %v2279_v32 }
 0x1a3   :  { %v2281_v33 = vpop.xlane.xlu0 %2280 }
 0x1a4   :  { %v2282_v34 = vsub.f32 %v2275_v30, %v2281_v33 }
 0x1a6   :  { %v2283_v35 = vmul.f32 1.442695, %v2282_v34 }
 0x1a8   :  { %2336 = vpow2.f32 %v2283_v35 }
 0x1b5   :  { %v2337_v36 = vpop.eup %2336 }
 0x1b6   :  { %v2285_v37 = vsel %vm2278_vm0, %v2337_v36, 0.0 }
 0x1b7   :  { %2286 = vadd.xlane.f32.xlu0 %v2285_v37 }
 0x240   :  { %v2287_v38 = vpop.xlane.xlu0 %2286 }
 0x241   :  { %2338 = vrcp.f32 %v2287_v38 }
 0x24e   :  { %v2339_v39 = vpop.eup %2338 }
 0x24f   :  { %v2289_v40 = vmul.f32 %v2339_v39, %v2337_v36 }
 0x251   :  { %2290 = vst.msk [vmem:[#allocation7] sm:$0x3] %vm2278_vm0, %v2289_v40 }
 0x252   :  { %2391 = shalt.err (!%p2388_p0)
}
 0x253   :  { %2300 = dma.vmem_to_hbm [thread:$0]  %s2298_s22, 32, %s2498_s3, [#allocation4]  }
 0x254   :  { %2404 = dma.done.wait [#allocation4], 32  }
 0x255   :  { %2405 = vsyncadd [#allocation4], 4294967264 }
 0x256   :  { %2304 = vsyncpa [#allocation3], 1 }
 0x257   :  { %2305 = vsyncpa [#allocation6], 1 }
 0x258   :  { %2306 = vsyncpa [#allocation4], 1 }

</bundles_post_ra>
